<compile_context>
chip_gen: v5e
topology: v5e:2x2
jax: 0.10.0
libtpu: 0.0.40
codegen_flags: <defaults>
</compile_context>

<pallas_src>
import functools

import jax
import jax.numpy as jnp
from jax.experimental import pallas as pl
from jax.experimental.pallas import tpu as pltpu


def _rot(v, shift, size):
    """jnp.roll semantics along the lane (last) axis via an XLU rotate."""
    s = shift % size          # pltpu.roll requires a non-negative shift
    if s == 0:
        return v
    return pltpu.roll(v, s, axis=1)


def _df_kernel(cr_ref, wb_ref, x_ref, o_ref, *, H, W, K, plumb_dtype):
    """One (n, channel-block) slab per grid step.

    cr_ref: VMEM i32[2, H*W]       row 0: column index, row 1: row index
    wb_ref: VMEM f32[1, Cb, 16]    taps 0..K*K-1, bias at K*K, zero pad after
    x_ref:  VMEM      [1, Cb, H*W] input planes, lane-dense flattened
    o_ref:  VMEM      [1, Cb, H*W] output planes
    """
    HW = H * W
    K2 = K * K
    Cb = x_ref.shape[1]

    xv = x_ref[0].astype(plumb_dtype)            # (Cb, HW) roll/select plumbing dtype
    wv = wb_ref[0]                               # (Cb, 16) f32

    # Boundary masks from the VMEM-resident col/row index planes (no div/mod).
    col = jnp.broadcast_to(cr_ref[0:1, :], (Cb, HW))
    row = jnp.broadcast_to(cr_ref[1:2, :], (Cb, HW))
    at_left = col == 0
    at_right = col == W - 1
    at_top = row == 0
    at_bot = row == H - 1

    # Column-shifted planes with reflection (ReflectionPad2d excludes the edge).
    minus1 = _rot(xv, 1, HW)                     # x[h, w-1]   (wraps at w == 0)
    plus1 = _rot(xv, -1, HW)                     # x[h, w+1]   (wraps at w == W-1)
    cp_m = jnp.where(at_left, plus1, minus1)     # dw = -1 -> reflect to x[h, 1]
    cp_p = jnp.where(at_right, minus1, plus1)    # dw = +1 -> reflect to x[h, W-2]

    # Separable tap accumulation (f32 accumulate, v5e-safe):
    #   S_kh = sum_kw w[kh*K + kw] * col_plane_kw; only S_0 / S_2 get row shifts.
    cm = cp_m.astype(jnp.float32)
    c0 = xv.astype(jnp.float32)
    cp = cp_p.astype(jnp.float32)

    def tap(t):
        return wv[:, t:t + 1]                    # (Cb, 1) per-channel scalar

    s_rows = []
    for kh in range(K):
        s_rows.append(cm * tap(kh * K + 0) + c0 * tap(kh * K + 1)
                      + cp * tap(kh * K + 2))
    s0, s1, s2 = s_rows

    # Row shifts with reflection (top row reflects to row 1, bottom to H-2).
    up = jnp.where(at_top, _rot(s0, -W, HW), _rot(s0, W, HW))
    dn = jnp.where(at_bot, _rot(s2, W, HW), _rot(s2, -W, HW))

    bias = tap(K2)                               # (Cb, 1)
    o_ref[0] = (up + s1 + dn + bias).astype(o_ref.dtype)


def _pick_cb(C, HW, itemsize, N):
    """Channels per block: divisor of C, multiple of the dtype sublane packing
    (8 f32 / 16 bf16 / 32 int8), sized so one (Cb, HW) f32 working plane stays
    near the vreg file (~32 KiB; the kernel keeps ~8-10 such planes live), then
    reduced if the parallel grid would have too few steps (v7x has 2 TCs)."""
    mult = 8 * max(1, 4 // max(1, itemsize))
    cands = [d for d in range(mult, C + 1, mult) if C % d == 0]
    if not cands:
        return C                                 # full channel dim is always a legal block
    cap = max(1, (32 * 1024) // (HW * 4))
    within = [d for d in cands if d <= cap]
    cb = max(within) if within else cands[0]
    while N * (C // cb) < 8:
        smaller = [d for d in cands if d < cb]
        if not smaller:
            break
        cb = max(smaller)
    return cb


def _plumb_dtype(x_dtype):
    """bf16 roll/select plumbing on v6e/v7x (f32 accumulate); f32 otherwise."""
    if x_dtype != jnp.bfloat16:
        return jnp.float32
    try:
        kind = jax.devices()[0].device_kind.lower()
    except Exception:
        return jnp.float32
    if "v5 lite" in kind or "v5e" in kind or "v5lite" in kind:
        return jnp.float32                       # v5e has no bf16 VPU path
    return jnp.bfloat16


def dynamic_filter_pallas(x, params):
    N, C, H, W = x.shape
    G = params["group"]
    K = params["kernel_size"]
    dil = params["dilation"]
    K2 = K * K
    assert C % G == 0
    assert H >= 2 and W >= 2
    # TODO(synk): in-kernel reflection shifts cover the module defaults only
    # (kernel_size=3, dilation=1); general K/dilation would need multi-step taps.
    assert K == 3 and dil == 1, "kernel supports kernel_size=3, dilation=1"

    # ---------------- tiny glue (plain JAX, O(N*C)) ----------------
    xf32 = x.astype(jnp.float32)
    gap = jnp.mean(xf32, axis=(2, 3))                      # ap == gap -> (N, C)
    lf = gap @ params["conv_w"].T                          # 1x1 conv on pooled map
    lf = (lf - params["bn_mean"]) * jax.lax.rsqrt(params["bn_var"] + 1e-5)
    lf = lf * params["bn_gamma"] + params["bn_beta"]       # BN (eval semantics)
    filt = jnp.tanh(lf).reshape(N, G, K2)
    filt_c = jnp.repeat(filt, C // G, axis=1)              # (N, C, K2)

    lamb_l = params["lamb_l"]
    lamb_h = params["lamb_h"]
    inside = params["inside_all"]
    a = lamb_l * (inside + 1.0)                            # (C,)
    d = lamb_h + 1.0                                       # (C,)
    # Fold everything into per-channel tap weights + one additive constant:
    #   out[n,c,h,w] = sum_t w[n,c,t] * shifted_t[n,c,h,w] + b[n,c]
    w = filt_c * a[None, :, None]                          # (N, C, K2)
    center = (K // 2) * K + (K // 2)
    w = w.at[:, :, center].add(d[None, :])                 # identity -> center tap
    b = -(lamb_l * inside)[None, :] * gap                  # (N, C)

    # Taps + bias merged into one f32 operand (9 taps, bias, zero pad -> 16 lanes).
    wb = jnp.zeros((N, C, 16), jnp.float32)
    wb = wb.at[:, :, :K2].set(w.astype(jnp.float32))
    wb = wb.at[:, :, K2].set(b.astype(jnp.float32))

    HW = H * W
    lane = jnp.arange(HW, dtype=jnp.int32)
    colrow = jnp.stack([lane % W, lane // W], axis=0)      # (2, HW) int32

    x_flat = x.reshape(N, C, HW)                           # free contiguous collapse
    Cb = _pick_cb(C, HW, x.dtype.itemsize, N)
    grid = (N, C // Cb)

    kernel = functools.partial(_df_kernel, H=H, W=W, K=K,
                               plumb_dtype=_plumb_dtype(x.dtype))
    flops = int(N * C * HW * (2 * K2 + 8))
    bytes_acc = int(2 * N * C * HW * x.dtype.itemsize + N * C * 16 * 4 + 2 * HW * 4)

    out = pl.pallas_call(
        kernel,
        out_shape=jax.ShapeDtypeStruct((N, C, HW), x.dtype),
        grid=grid,
        in_specs=[
            pl.BlockSpec((2, HW), lambda n, c: (0, 0)),          # col/row planes (resident)
            pl.BlockSpec((1, Cb, 16), lambda n, c: (n, c, 0)),   # taps + bias
            pl.BlockSpec((1, Cb, HW), lambda n, c: (n, c, 0)),   # input planes
        ],
        out_specs=pl.BlockSpec((1, Cb, HW), lambda n, c: (n, c, 0)),
        compiler_params=pltpu.CompilerParams(
            dimension_semantics=("parallel", "parallel"),
            vmem_limit_bytes=32 * 1024 * 1024,
        ),
        cost_estimate=pl.CostEstimate(
            flops=flops, transcendentals=0, bytes_accessed=bytes_acc),
    )(colrow, wb, x_flat)
    return out.reshape(N, C, H, W)


def dynamic_filter_ref(x, params):
    """Pure-JAX reference replicating the PyTorch forward exactly (dil=1)."""
    N, C, H, W = x.shape
    G = params["group"]
    K = params["kernel_size"]
    dil = params["dilation"]
    K2 = K * K
    pad = dil * (K - 1) // 2

    gap = jnp.mean(x, axis=(2, 3))                         # ap == gap
    lf = gap @ params["conv_w"].T
    lf = (lf - params["bn_mean"]) * jax.lax.rsqrt(params["bn_var"] + 1e-5)
    lf = lf * params["bn_gamma"] + params["bn_beta"]
    filt = jnp.tanh(lf).reshape(N, G, K2)
    filt_c = jnp.repeat(filt, C // G, axis=1)              # (N, C, K2)

    x_pad = jnp.pad(x, ((0, 0), (0, 0), (pad, pad), (pad, pad)), mode="reflect")
    patches = jnp.stack(
        [x_pad[:, :, kh:kh + H, kw:kw + W] for kh in range(K) for kw in range(K)],
        axis=2,
    )                                                      # (N, C, K2, H, W)
    low_part = jnp.einsum("nckhw,nck->nchw", patches, filt_c)

    inside = params["inside_all"][None, :, None, None]
    out_low = low_part * (inside + 1.0) - inside * gap[:, :, None, None]
    out_low = out_low * params["lamb_l"][None, :, None, None]
    out_high = x * (params["lamb_h"][None, :, None, None] + 1.0)
    return out_low + out_high


if __name__ == "__main__":
    key = jax.random.PRNGKey(0)
    ks = jax.random.split(key, 5)

    N, C, H, W = 2, 16, 16, 16
    G, K, DIL = 8, 3, 1
    K2 = K * K

    x = jax.random.normal(ks[0], (N, C, H, W), jnp.float32)

    # conv: Conv2d(C, G*K2, 1, bias=False), kaiming_normal_(fan_out, relu)
    conv_w = jax.random.normal(ks[1], (G * K2, C), jnp.float32) * jnp.sqrt(
        2.0 / (G * K2)
    )

    params = dict(
        group=G,
        kernel_size=K,
        dilation=DIL,
        conv_w=conv_w,
        # BatchNorm2d(G*K2) freshly initialized (eval-mode running stats)
        bn_gamma=jnp.ones((G * K2,), jnp.float32),
        bn_beta=jnp.zeros((G * K2,), jnp.float32),
        bn_mean=jnp.zeros((G * K2,), jnp.float32),
        bn_var=jnp.ones((G * K2,), jnp.float32),
        # The module __init__ zeros these (which would make out == x); use small
        # deterministic values so the kernel compute path is actually exercised.
        lamb_l=0.1 * jax.random.normal(ks[2], (C,), jnp.float32),
        lamb_h=0.1 * jax.random.normal(ks[3], (C,), jnp.float32),
        inside_all=0.1 * jax.random.normal(ks[4], (C,), jnp.float32),
    )

    out = jax.block_until_ready(dynamic_filter_pallas(x, params))
    ref = dynamic_filter_ref(x, params)
    err = float(jnp.max(jnp.abs(out - ref)))
    assert out.shape == (N, C, H, W)
    assert jnp.allclose(out, ref, atol=1e-4, rtol=1e-4), f"max abs err {err}"
    print("KERNEL_OK")
</pallas_src>

<mosaic_0001>
module attributes {stable_mosaic.version = 11 : i64} {
  func.func @_df_kernel(%arg0: i32, %arg1: i32, %arg2: memref<2x256xi32, #tpu.memory_space<vmem>>, %arg3: memref<1x8x16xf32, #tpu.memory_space<vmem>>, %arg4: memref<1x8x256xf32, #tpu.memory_space<vmem>>, %arg5: memref<1x8x256xf32, #tpu.memory_space<vmem>>) attributes {dimension_semantics = [#tpu.dimension_semantics<parallel>, #tpu.dimension_semantics<parallel>], iteration_bounds = array<i64: 2, 2>, scalar_prefetch = 0 : i64, scratch_operands = 0 : i64, tpu.core_type = #tpu.core_type<tc>, window_params = [{pipeline_mode = #tpu.pipeline_mode<synchronous>, transform_indices = @transform_0, window_bounds = array<i64: 2, 256>}, {transform_indices = @transform_1, window_bounds = array<i64: 1, 8, 16>}, {transform_indices = @transform_2, window_bounds = array<i64: 1, 8, 256>}, {transform_indices = @transform_3, window_bounds = array<i64: 1, 8, 256>}]} {
    %c0 = arith.constant 0 : index
    %c0_0 = arith.constant 0 : index
    %c0_1 = arith.constant 0 : index
    %0 = vector.load %arg4[%c0, %c0_0, %c0_1] : memref<1x8x256xf32, #tpu.memory_space<vmem>>, vector<1x8x256xf32>
    %1 = vector.shape_cast %0 : vector<1x8x256xf32> to vector<8x256xf32>
    %c0_2 = arith.constant 0 : index
    %c0_3 = arith.constant 0 : index
    %c0_4 = arith.constant 0 : index
    %2 = vector.load %arg3[%c0_2, %c0_3, %c0_4] : memref<1x8x16xf32, #tpu.memory_space<vmem>>, vector<1x8x16xf32>
    %3 = vector.shape_cast %2 : vector<1x8x16xf32> to vector<8x16xf32>
    %c0_5 = arith.constant 0 : index
    %c0_6 = arith.constant 0 : index
    %4 = vector.load %arg2[%c0_5, %c0_6] : memref<2x256xi32, #tpu.memory_space<vmem>>, vector<1x256xi32>
    %5 = vector.shape_cast %4 : vector<1x256xi32> to vector<1x256xi32>
    %6 = vector.broadcast %5 : vector<1x256xi32> to vector<8x256xi32>
    %c1 = arith.constant 1 : index
    %c0_7 = arith.constant 0 : index
    %7 = vector.load %arg2[%c1, %c0_7] : memref<2x256xi32, #tpu.memory_space<vmem>>, vector<1x256xi32>
    %8 = vector.shape_cast %7 : vector<1x256xi32> to vector<1x256xi32>
    %9 = vector.broadcast %8 : vector<1x256xi32> to vector<8x256xi32>
    %c0_i32 = arith.constant 0 : i32
    %10 = vector.broadcast %c0_i32 : i32 to vector<8x256xi32>
    %11 = arith.cmpi eq, %6, %10 : vector<8x256xi32>
    %c15_i32 = arith.constant 15 : i32
    %12 = vector.broadcast %c15_i32 : i32 to vector<8x256xi32>
    %13 = arith.cmpi eq, %6, %12 : vector<8x256xi32>
    %c0_i32_8 = arith.constant 0 : i32
    %14 = vector.broadcast %c0_i32_8 : i32 to vector<8x256xi32>
    %15 = arith.cmpi eq, %9, %14 : vector<8x256xi32>
    %c15_i32_9 = arith.constant 15 : i32
    %16 = vector.broadcast %c15_i32_9 : i32 to vector<8x256xi32>
    %17 = arith.cmpi eq, %9, %16 : vector<8x256xi32>
    %c1_i32 = arith.constant 1 : i32
    %18 = tpu.dynamic_rotate %1 by %c1_i32 dim 1 : vector<8x256xf32>, i32 -> vector<8x256xf32>
    %c255_i32 = arith.constant 255 : i32
    %19 = tpu.dynamic_rotate %1 by %c255_i32 dim 1 : vector<8x256xf32>, i32 -> vector<8x256xf32>
    %20 = arith.select %11, %19, %18 : vector<8x256xi1>, vector<8x256xf32>
    %21 = arith.select %13, %18, %19 : vector<8x256xi1>, vector<8x256xf32>
    %22 = vector.extract_strided_slice %3 {offsets = [0, 0], sizes = [8, 1], strides = [1, 1]} : vector<8x16xf32> to vector<8x1xf32>
    %23 = vector.broadcast %22 : vector<8x1xf32> to vector<8x256xf32>
    %24 = arith.mulf %20, %23 : vector<8x256xf32>
    %25 = vector.extract_strided_slice %3 {offsets = [0, 1], sizes = [8, 1], strides = [1, 1]} : vector<8x16xf32> to vector<8x1xf32>
    %26 = vector.broadcast %25 : vector<8x1xf32> to vector<8x256xf32>
    %27 = arith.mulf %1, %26 : vector<8x256xf32>
    %28 = arith.addf %24, %27 : vector<8x256xf32>
    %29 = vector.extract_strided_slice %3 {offsets = [0, 2], sizes = [8, 1], strides = [1, 1]} : vector<8x16xf32> to vector<8x1xf32>
    %30 = vector.broadcast %29 : vector<8x1xf32> to vector<8x256xf32>
    %31 = arith.mulf %21, %30 : vector<8x256xf32>
    %32 = arith.addf %28, %31 : vector<8x256xf32>
    %33 = vector.extract_strided_slice %3 {offsets = [0, 3], sizes = [8, 1], strides = [1, 1]} : vector<8x16xf32> to vector<8x1xf32>
    %34 = vector.broadcast %33 : vector<8x1xf32> to vector<8x256xf32>
    %35 = arith.mulf %20, %34 : vector<8x256xf32>
    %36 = vector.extract_strided_slice %3 {offsets = [0, 4], sizes = [8, 1], strides = [1, 1]} : vector<8x16xf32> to vector<8x1xf32>
    %37 = vector.broadcast %36 : vector<8x1xf32> to vector<8x256xf32>
    %38 = arith.mulf %1, %37 : vector<8x256xf32>
    %39 = arith.addf %35, %38 : vector<8x256xf32>
    %40 = vector.extract_strided_slice %3 {offsets = [0, 5], sizes = [8, 1], strides = [1, 1]} : vector<8x16xf32> to vector<8x1xf32>
    %41 = vector.broadcast %40 : vector<8x1xf32> to vector<8x256xf32>
    %42 = arith.mulf %21, %41 : vector<8x256xf32>
    %43 = arith.addf %39, %42 : vector<8x256xf32>
    %44 = vector.extract_strided_slice %3 {offsets = [0, 6], sizes = [8, 1], strides = [1, 1]} : vector<8x16xf32> to vector<8x1xf32>
    %45 = vector.broadcast %44 : vector<8x1xf32> to vector<8x256xf32>
    %46 = arith.mulf %20, %45 : vector<8x256xf32>
    %47 = vector.extract_strided_slice %3 {offsets = [0, 7], sizes = [8, 1], strides = [1, 1]} : vector<8x16xf32> to vector<8x1xf32>
    %48 = vector.broadcast %47 : vector<8x1xf32> to vector<8x256xf32>
    %49 = arith.mulf %1, %48 : vector<8x256xf32>
    %50 = arith.addf %46, %49 : vector<8x256xf32>
    %51 = vector.extract_strided_slice %3 {offsets = [0, 8], sizes = [8, 1], strides = [1, 1]} : vector<8x16xf32> to vector<8x1xf32>
    %52 = vector.broadcast %51 : vector<8x1xf32> to vector<8x256xf32>
    %53 = arith.mulf %21, %52 : vector<8x256xf32>
    %54 = arith.addf %50, %53 : vector<8x256xf32>
    %c240_i32 = arith.constant 240 : i32
    %55 = tpu.dynamic_rotate %32 by %c240_i32 dim 1 : vector<8x256xf32>, i32 -> vector<8x256xf32>
    %c16_i32 = arith.constant 16 : i32
    %56 = tpu.dynamic_rotate %32 by %c16_i32 dim 1 : vector<8x256xf32>, i32 -> vector<8x256xf32>
    %57 = arith.select %15, %55, %56 : vector<8x256xi1>, vector<8x256xf32>
    %c16_i32_10 = arith.constant 16 : i32
    %58 = tpu.dynamic_rotate %54 by %c16_i32_10 dim 1 : vector<8x256xf32>, i32 -> vector<8x256xf32>
    %c240_i32_11 = arith.constant 240 : i32
    %59 = tpu.dynamic_rotate %54 by %c240_i32_11 dim 1 : vector<8x256xf32>, i32 -> vector<8x256xf32>
    %60 = arith.select %17, %58, %59 : vector<8x256xi1>, vector<8x256xf32>
    %61 = vector.extract_strided_slice %3 {offsets = [0, 9], sizes = [8, 1], strides = [1, 1]} : vector<8x16xf32> to vector<8x1xf32>
    %62 = arith.addf %57, %43 : vector<8x256xf32>
    %63 = arith.addf %62, %60 : vector<8x256xf32>
    %64 = vector.broadcast %61 : vector<8x1xf32> to vector<8x256xf32>
    %65 = arith.addf %63, %64 : vector<8x256xf32>
    %c0_12 = arith.constant 0 : index
    %c0_13 = arith.constant 0 : index
    %c0_14 = arith.constant 0 : index
    %66 = vector.load %arg5[%c0_12, %c0_13, %c0_14] : memref<1x8x256xf32, #tpu.memory_space<vmem>>, vector<1x8x256xf32>
    %67 = vector.shape_cast %66 : vector<1x8x256xf32> to vector<8x256xf32>
    %68 = vector.shape_cast %65 : vector<8x256xf32> to vector<1x8x256xf32>
    tpu.vector_store %arg5[%c0_12, %c0_13, %c0_14], %68 {strides = array<i32>} : memref<1x8x256xf32, #tpu.memory_space<vmem>>, vector<1x8x256xf32>,
    return
  }
  func.func @transform_0(%arg0: i32, %arg1: i32) -> (i32, i32) {
    %c0_i32 = arith.constant 0 : i32
    %c0_i32_0 = arith.constant 0 : i32
    %c0_i32_1 = arith.constant 0 : i32
    return %c0_i32, %c0_i32_0 : i32, i32
  }
  func.func @transform_1(%arg0: i32, %arg1: i32) -> (i32, i32, i32) {
    %c0_i32 = arith.constant 0 : i32
    %c0_i32_0 = arith.constant 0 : i32
    return %arg0, %arg1, %c0_i32 : i32, i32, i32
  }
  func.func @transform_2(%arg0: i32, %arg1: i32) -> (i32, i32, i32) {
    %c0_i32 = arith.constant 0 : i32
    %c0_i32_0 = arith.constant 0 : i32
    return %arg0, %arg1, %c0_i32 : i32, i32, i32
  }
  func.func @transform_3(%arg0: i32, %arg1: i32) -> (i32, i32, i32) {
    %c0_i32 = arith.constant 0 : i32
    %c0_i32_0 = arith.constant 0 : i32
    return %arg0, %arg1, %c0_i32 : i32, i32, i32
  }
}

</mosaic_0001>

<bundles_post_ra>
// kernel: tpu_custom_call.1
= control target key start
LH: loop header
LB: loop body
LE: loop exit
PB: predicated region body
PF: predicated region fallthrough
CT: control target
= control target key end

     0   :  { %s1172_s0 = inlined_call_operand.hbm [shape: s32[2,256], index: 0, kind: input, shape index: {}]   ;;  %s1173_s1 = inlined_call_operand.hbm [shape: f32[2,16,16], index: 1, kind: input, shape index: {}]   ;;  %s1174_s2 = inlined_call_operand.hbm [shape: f32[2,16,256], index: 2, kind: input, shape index: {}]   ;;  %s1175_s3 = inlined_call_operand.hbm [shape: f32[2,16,256], index: 3, kind: output, shape index: {}]  }
   0x1   :  { %1178 = sst [smem:[#allocation15_spill]] %s1172_s0 }
   0x2   :  { %1179 = sst [smem:[#allocation16_spill]] %s1173_s1 }
   0x3   :  { %8 = vsyncpa [#allocation3], 0 }
   0x4   :  { %9 = vsyncpa [#allocation6], 0 }
   0x5   :  { %11 = vsyncpa [#allocation6 + $0x1], 0 }
   0x6   :  { %12 = vsyncpa [#allocation4], 0 }
   0x7   :  { %14 = vsyncpa [#allocation4 + $0x1], 0  ;;  %s920_s12 = smov 0   ;;  %s922_s13 = smov 0  }
   0x8   :  { %s924_s14 = smov 0   ;;  %s926_s15 = smov 0  }
   0x9   :  { %s928_s16 = smov 0   ;;  %s930_s17 = smov 0  }
   0xa   :  { %s932_s18 = smov 0   ;;  %s934_s19 = smov 0  }
   0xb LB: > { %s29_s20 = sadd.s32 1, %s875_s17  ;;  %s32_s21 = sadd.s32 1, %s879_s18  ;;  %s883_s19 = sphi %s934_s19, %s20_s19   ;;  %s879_s18 = sphi %s932_s18, %s1200_s18   ;;  %s875_s17 = sphi %s930_s17, %s1199_s17   ;;  %s871_s16 = sphi %s928_s16, %s1198_s16   ;;  %s867_s15 = sphi %s926_s15, %s1197_s15   ;;  %s863_s14 = sphi %s924_s14, %s1196_s14   ;;  %s859_s13 = sphi %s922_s13, %s1195_s13   ;;  %s855_s12 = sphi %s920_s12, %s1194_s12  }
   0xc   : > { %p30_p0 = scmp.ge.s32.totalorder %s29_s20, 2  ;;  %s62_s22 = sadd.s32 1, %s863_s14 }
   0xd   : > { %p69_p1 = scmp.ne.s32.totalorder %s863_s14, %s859_s13  ;;  %p70_p2 = scmp.eq.s32.totalorder %s883_s19, 0 }
   0xe   : > { %s1202_s20 = smov (%p30_p0, %s29_s20), 0  ;;  %s1204_s21 = smov (!%p30_p0, %s32_s21), %s879_s18 }
   0xf   : > { %1180 = sst [smem:[#allocation12_spill]] %s1202_s20  ;;  %s58_s23 = ssub.s32 %s875_s17, %s1202_s20 }
  0x10   : > { %p974_p3 = por %p70_p2, %p69_p1  ;;  %p34_p4 = scmp.ge.s32.totalorder %s1204_s21, 2 }
  0x11   : > { %p598_p5 = scmp.lt.s32.totalorder %s883_s19, 4  ;;  %s167_s25 = sand.u32 1, %s883_s19  }
  0x12   : > { %s1206_s21 = smov (%p34_p4, %s1204_s21), 0  ;;  %s169_s26 = sand.u32 1, %s863_s14  }
  0x13   : > { %1182 = sst [smem:[#allocation13_spill]] %s1206_s21  ;;  %s57_s27 = ssub.s32 %s879_s18, %s1206_s21 }
  0x14   : > { %s554_s28 = sshll.u32 %s169_s26, 3  ;;  %s59_s29 = sor.u32 %s58_s23, %s57_s27 }
  0x15   : > { %p60_p6 = scmp.eq.s32.totalorder %s59_s29, 0  ;;  %s555_s30 = sshll.u32 %s879_s18, 1 }
  0x16   : > { %s175_s4 = sadd.s32 %s875_s17, %s555_s30  ;;  %s171_s5 = scalar_lea.vmem [#allocation5], %s554_s28 }
  0x17   : > { %s181_s6 = sshll.u32 %s171_s5, 4  ;;  %s556_s8 = sshll.u32 %s175_s4, 3  ;;  %s182_s6 = int_to_ptr.vmem [resolvable:$true] %s181_s6 }
  0x18   : > { %s988_s7 = scalar_select %p60_p6, %s863_s14, %s62_s22  }
  0x19   : > { %s1184_s1 = sld [smem:[#allocation16_spill]]  ;;  %p997_p7 = pnand %p598_p5, %p974_p3 }
  0x1a   : > { %1183 = sst [smem:[#allocation14_spill]] %s988_s7  ;;  %s557_s22 = sshll.u32 %s169_s26, 4 }
  0x1b   : > { %s1001_s28 = scalar_lea.sflag [#allocation6], %s167_s25  ;;  %s1007_s29 = sadd.s32 4294967295, %s883_s19  }
  0x1c   : > { %s550_s24 = sadd.s32 4294967294, %s883_s19   ;;  %p75_p8 = scmp.ne.s32.totalorder %s859_s13, %s855_s12 }
  0x1d   : > { %p76_p9 = scmp.eq.s32.totalorder %s1007_s29, 0  ;;  %p129_p10 = scmp.eq.s32.totalorder %s1007_s29, 3 }
  0x1e   : > { %p135_p11 = scmp.eq.s32.totalorder %s550_s24, 3  ;;  %p551_p13 = scmp.ge.s32.totalorder %s883_s19, 1 }
  0x1f   : > { %s177_s11 = scalar_lea.hbm %s1184_s1, %s556_s8  ;;  %p1016_p12 = por %p76_p9, %p75_p8 }
  0x20   : > { %s179_s27 = sshll.u32 %s177_s11, 4  ;;  %p1024_p0 = por %p129_p10, %p69_p1  ;;  %s180_s27 = int_to_ptr.hbm [resolvable:$true] %s179_s27 }
  0x21   : > { %589 = dma.hbm_to_vmem [thread:$0]  (!%p997_p7), %s180_s27, 128, %s182_s6, %s1001_s28  }
  0x22   : > { %p1028_p2 = por %p135_p11, %p75_p8  ;;  %p142_p3 = scmp.lt.s32.totalorder %s883_s19, 5 }
  0x23   : > { %s1189_s0 = sld [smem:[#allocation15_spill]]  ;;  %s885_s9 = smov [#allocation2]  }
  0x24   : > { %p1036_p4 = pnand %p551_p13, %p142_p3  ;;  %s156_s10 = sshll.u32 %s885_s9, 4  ;;  %s157_s10 = int_to_ptr.vmem [resolvable:$true] %s156_s10 }
  0x25   : > { %s558_s11 = sshll.u32 %s875_s17, 1  ;;  %s559_s27 = sshll.u32 %s879_s18, 2 }
  0x26   : > { %p582_p1 = pneg %p1036_p4  ;;  %s197_s24 = sadd.s32 %s559_s27, %s558_s11 }
  0x27   : > { %s560_s4 = sshll.u32 %s197_s24, 3  ;;  %s192_s5 = scalar_lea.vmem [#allocation7], %s557_s22 }
  0x28   : > { %p583_p5 = pnand %p582_p1, %p76_p9  ;;  %s199_s20 = scalar_lea.hbm %s1174_s2, %s560_s4 }
  0x29   : > { %s154_s6 = sshll.u32 %s1189_s0, 4  ;;  %s203_s0 = sshll.u32 %s192_s5, 4  ;;  %s155_s6 = int_to_ptr.hbm [resolvable:$true] %s154_s6  ;;  %s204_s0 = int_to_ptr.vmem [resolvable:$true] %s203_s0 }
  0x2a   : > { %585 = dma.hbm_to_vmem [thread:$0]  (!%p583_p5), %s155_s6, 64, %s157_s10, [#allocation3]  }
  0x2b   : > { %s201_s7 = sshll.u32 %s199_s20, 4  ;;  %212 = sbr.rel (%p1036_p4) target bundleno = 334 (0x14e), region = 32  ;;  %s202_s7 = int_to_ptr.hbm [resolvable:$true] %s201_s7 }
  0x2c   : > { %592 = dma.hbm_to_vmem [thread:$0]  (!%p997_p7), %s202_s7, 256, %s204_s0, %s1001_s28  }
  0x30   : > { %842 = dma.done.wait (%p76_p9), [#allocation3], 64  }
  0x31   : > { %844 = vsyncadd (%p76_p9), [#allocation3], 4294967232  ;;  %s219_s1 = sand.u32 1, %s1007_s29   ;;  %s1060_s21 = sand.u32 1, %s859_s13  }
  0x32   : > { %s563_s20 = sshll.u32 %s1060_s21, 3  ;;  %s220_s22 = scalar_lea.sflag [#allocation6], %s219_s1 }
  0x33   : > { %s223_s23 = scalar_lea.vmem [#allocation5], %s563_s20 }
  0x34   : > { %846 = dma.done.wait (%p1016_p12), %s220_s22, 384  }
  0x35   : > { %848 = vsyncadd (%p1016_p12), %s220_s22, 4294966912  ;;  %s564_s0 = sshll.u32 %s1060_s21, 4  ;;  %v886_v0 = vmov 0   ;;  %v887_v1 = vmov 6   ;;  %v888_v2 = vmov 2   ;;  %v1072_v4 = vld [vmem:[%s223_s23] sm:$0xff]  ;;  %v284_v12 = vlaneseq }
  0x36   : > { %680 = vset.pattern.permute.xlu2 %v886_v0  ;;  %683 = vset.pattern.permute.xlu1 %v887_v1  ;;  %s233_s7 = scalar_lea.vmem [#allocation7], %s564_s0  ;;  %s889_s28 = smov 127   ;;  %v891_v6 = vmov 1   ;;  %v892_v7 = vmov 7   ;;  %v893_v8 = vmov 8   ;;  %v894_v9 = vmov 4  }
  0x37   : > { %682 = vset.pattern.permute.xlu0 %v888_v2  ;;  %v1070_v3 = vld [vmem:[%s233_s7] sm:$0xff]  ;;  %s890_s29 = smov 1   ;;  %302 = vperm.xlu2 %680, %v1072_v4   ;;  %v1077_v5 = vld [vmem:[%s233_s7 + $0x8] sm:$0xff]  ;;  %v895_v10 = vmov 3   ;;  %v896_v11 = vmov 5   ;;  %v1089_v17 = vand.u32 127, %v284_v12 }
  0x38   : > { %289 = vrot.lane.b32.xlu1 %v1070_v3, %s889_s28  ;;  %280 = vrot.lane.b32.xlu0 %v1070_v3, %s890_s29  ;;  %v265_v16 = vld [vmem:[#allocation2] ss:$2 sm:$0x3]  ;;  %v897_v22 = vmov 9   ;;  %s898_s25 = smov 16   ;;  %s899_s6 = smov 112  }
  0x39   : > { %v266_v18 = vperm.slane %v265_v16, 0  ;;  %v267_v19 = vperm.slane %v265_v16, 1  ;;  %vm293_vm0 = vcmp.lt.s32.totalorder %v1089_v17, 127  ;;  %vm286_vm1 = vcmp.lt.s32.totalorder %v1089_v17, 1  ;;  %s567_s8 = sshll.u32 %s867_s15, 1  ;;  %s568_s9 = sshll.u32 %s871_s16, 2 }
  0x3a   : > { %vm371_vm6 = vcmp.lt.s32.totalorder %v1089_v17, 112  ;;  %vm378_vm7 = vcmp.lt.s32.totalorder %v1089_v17, 16  ;;  %s421_s10 = sadd.s32 %s568_s9, %s567_s8  ;;  %s261_s24 = scalar_lea.vmem [#allocation8], %s564_s0 }
  0x3b   : > { %vm272_vm2 = vcmp.eq.s32.totalorder %v266_v18, 0  ;;  %vm273_vm3 = vcmp.eq.s32.totalorder %v267_v19, 0  ;;  %vm274_vm4 = vcmp.eq.s32.totalorder %v266_v18, 15  ;;  %vm275_vm5 = vcmp.eq.s32.totalorder %v267_v19, 15  ;;  %s569_s15 = sshll.u32 %s421_s10, 3  ;;  %s425_s4 = sshll.u32 %s261_s24, 4  ;;  %s426_s4 = int_to_ptr.vmem [resolvable:$true] %s425_s4 }
  0x3c   : > { %s423_s27 = scalar_lea.hbm %s1175_s3, %s569_s15  ;;  %s410_s1 = scalar_lea.sflag [#allocation4], %s1060_s21 }
  0x3d   : > { %s427_s5 = sshll.u32 %s423_s27, 4  ;;  %s801_s0 = scalar_lea.hbm %s1175_s3, 64  ;;  %s428_s5 = int_to_ptr.hbm [resolvable:$true] %s427_s5 }
  0x3e   : > { %s795_s20 = sshra.s32 %s428_s5, 4  ;;  %s796_s20 = int_to_ptr.hbm [resolvable:$true] %s795_s20 }
  0x3f   : > { %681 = vset.pattern.permute.xlu2 %v891_v6  ;;  %s797_s22 = scalar_lea.hbm %s796_s20, 16  ;;  %p802_p9 = scmp.lt.s32.totalorder %s796_s20, %s1175_s3 }
  0x40   : > { %291 = vrot.lane.b32.xlu1 %v1077_v5, %s889_s28  ;;  %282 = vrot.lane.b32.xlu0 %v1077_v5, %s890_s29  ;;  %p798_p6 = scmp.ne.s32.totalorder %s796_s20, %s797_s22  ;;  %p803_p10 = scmp.lt.s32.totalorder %s801_s0, %s797_s22 }
  0x41   : > { %308 = vperm.xlu2 %681, %v1072_v4  }
  0x42   : > { %p799_p7 = pnand %p798_p6, %p1024_p0  ;;  %p804_p11 = por %p803_p10, %p802_p9 }
  0x44   : > { %p800_p8 = pneg %p799_p7 }
  0x46   : > { %p805_p12 = pnand %p804_p11, %p800_p8 }
  0x48   : > { %346 = vperm.xlu1 %683, %v1072_v4   ;;  %316 = vperm.xlu0 %682, %v1072_v4  }
  0x49   : > { %684 = vset.pattern.permute.xlu2 %v892_v7 }
  0x4a   : > { %352 = vperm.xlu2 %684, %v1072_v4  }
  0x50   : > { %685 = vset.pattern.permute.xlu1 %v893_v8  ;;  %687 = vset.pattern.permute.xlu0 %v894_v9  ;;  %v269_v9 = vld [vmem:[#allocation2 + $0x1] ss:$2 sm:$0x3] }
  0x51   : > { %360 = vperm.xlu1 %685, %v1072_v4   ;;  %330 = vperm.xlu0 %687, %v1072_v4  }
  0x52   : > { %686 = vset.pattern.permute.xlu2 %v895_v10  ;;  %v270_v10 = vperm.slane %v269_v9, 0 }
  0x53   : > { %324 = vperm.xlu2 %686, %v1072_v4  }
  0x54   : > { %vm276_vm8 = vcmp.eq.s32.totalorder %v270_v10, 0  ;;  %vm278_vm10 = vcmp.eq.s32.totalorder %v270_v10, 15 }
  0x59   : > { %688 = vset.pattern.permute.xlu1 %v896_v11  ;;  %690 = vset.pattern.permute.xlu0 %v897_v22  ;;  %v271_v11 = vperm.slane %v269_v9, 1 }
  0x5a   : > { %338 = vperm.xlu1 %688, %v1072_v4  }
  0x5b   : > { %689 = vset.pattern.permute.xlu2 %v897_v22  ;;  %vm277_vm9 = vcmp.eq.s32.totalorder %v271_v11, 0  ;;  %vm279_vm11 = vcmp.eq.s32.totalorder %v271_v11, 15 }
  0x91   : > { %v303_v13 = vpop.permute.xlu2 %302 }
  0x9b   : > { %v309_v27 = vpop.permute.xlu2 %308 }
  0x9c   : > { %v311_v30 = vmul.f32 %v309_v27, %v1070_v3  ;;  %v312_v31 = vmul.f32 %v309_v27, %v1077_v5 }
  0xa4   : > { %v353_v44 = vpop.permute.xlu2 %352 }
  0xa5   : > { %v355_v45 = vmul.f32 %v353_v44, %v1070_v3  ;;  %v356_v52 = vmul.f32 %v353_v44, %v1077_v5 }
  0xaa   : > { %v290_v14 = vpop.permute.xlu1 %289  ;;  %v281_v15 = vpop.permute.xlu0 %280 }
  0xad   : > { %v325_v53 = vpop.permute.xlu2 %324 }
  0xb2   : > { %v292_v20 = vpop.permute.xlu1 %291  ;;  %v283_v21 = vpop.permute.xlu0 %282 }
  0xb3   : > { %v294_v23 = vsel %vm293_vm0, %v290_v14, %v292_v20  ;;  %v295_v24 = vsel %vm293_vm0, %v292_v20, %v290_v14  ;;  %v287_v25 = vsel %vm286_vm1, %v281_v15, %v283_v21  ;;  %v288_v26 = vsel %vm286_vm1, %v283_v21, %v281_v15 }
  0xb4   : > { %v296_v28 = vsel %vm272_vm2, %v294_v23, %v288_v26  ;;  %v297_v29 = vsel %vm273_vm3, %v295_v24, %v287_v25  ;;  %v298_v35 = vsel %vm274_vm4, %v288_v26, %v294_v23  ;;  %v299_v36 = vsel %vm275_vm5, %v287_v25, %v295_v24 }
  0xb5   : > { %v305_v32 = vmul.f32 %v303_v13, %v296_v28  ;;  %v306_v33 = vmul.f32 %v303_v13, %v297_v29  ;;  %v327_v58 = vmul.f32 %v325_v53, %v296_v28  ;;  %v328_v59 = vmul.f32 %v325_v53, %v297_v29 }
  0xb7   : > { %v314_v38 = vadd.f32 %v312_v31, %v306_v33  ;;  %v313_v39 = vadd.f32 %v311_v30, %v305_v32 }
  0xba   : > { %v347_v34 = vpop.permute.xlu1 %346  ;;  %v317_v37 = vpop.permute.xlu0 %316 }
  0xbb   : > { %v319_v40 = vmul.f32 %v317_v37, %v298_v35  ;;  %v320_v41 = vmul.f32 %v317_v37, %v299_v36  ;;  %v349_v46 = vmul.f32 %v347_v34, %v296_v28  ;;  %v350_v54 = vmul.f32 %v347_v34, %v297_v29 }
  0xbd   : > { %v321_v42 = vadd.f32 %v319_v40, %v313_v39  ;;  %v322_v43 = vadd.f32 %v320_v41, %v314_v38  ;;  %v357_v48 = vadd.f32 %v355_v45, %v349_v46  ;;  %v358_v60 = vadd.f32 %v356_v52, %v350_v54 }
  0xbf   : > { %376 = vrot.lane.b32.xlu0 %v322_v43, %s898_s25  ;;  %369 = vrot.lane.b32.xlu1 %v322_v43, %s899_s6 }
  0xc0   : > { %367 = vrot.lane.b32.xlu2 %v321_v42, %s899_s6 }
  0xc3   : > { %v361_v47 = vpop.permute.xlu1 %360  ;;  %v331_v51 = vpop.permute.xlu0 %330 }
  0xc4   : > { %v363_v49 = vmul.f32 %v361_v47, %v298_v35  ;;  %v333_v55 = vmul.f32 %v331_v51, %v1070_v3  ;;  %v334_v56 = vmul.f32 %v331_v51, %v1077_v5  ;;  %v364_v57 = vmul.f32 %v361_v47, %v299_v36 }
  0xc6   : > { %v365_v50 = vadd.f32 %v363_v49, %v357_v48  ;;  %v335_v62 = vadd.f32 %v333_v55, %v327_v58  ;;  %v336_v63 = vadd.f32 %v334_v56, %v328_v59  ;;  %v366_v2 = vadd.f32 %v364_v57, %v358_v60 }
  0xc8   : > { %374 = vrot.lane.b32.xlu2 %v321_v42, %s898_s25  ;;  %389 = vrot.lane.b32.xlu0 %v365_v50, %s899_s6 }
  0xc9   : > { %383 = vrot.lane.b32.xlu1 %v365_v50, %s898_s25 }
  0xcc   : > { %v339_v61 = vpop.permute.xlu1 %338 }
  0xcd   : > { %v341_v0 = vmul.f32 %v339_v61, %v298_v35  ;;  %v342_v1 = vmul.f32 %v339_v61, %v299_v36 }
  0xcf   : > { %v343_v6 = vadd.f32 %v341_v0, %v335_v62  ;;  %v344_v7 = vadd.f32 %v342_v1, %v336_v63 }
  0xd0   : > { %385 = vrot.lane.b32.xlu2 %v366_v2, %s898_s25 }
  0xd1   : > { %391 = vrot.lane.b32.xlu1 %v366_v2, %s899_s6 }
  0xd8   : > { %402 = vperm.xlu2 %689, %v1072_v4  }
 0x11a   : > { %v368_v3 = vpop.permute.xlu2 %367 }
 0x122   : > { %v375_v8 = vpop.permute.xlu2 %374 }
 0x12a   : > { %v386_v14 = vpop.permute.xlu2 %385 }
 0x131   : > { %v370_v5 = vpop.permute.xlu1 %369  ;;  %v377_v12 = vpop.permute.xlu0 %376 }
 0x132   : > { %v372_v4 = vsel %vm371_vm6, %v368_v3, %v370_v5  ;;  %v373_v15 = vsel %vm371_vm6, %v370_v5, %v368_v3  ;;  %v379_v16 = vsel %vm378_vm7, %v375_v8, %v377_v12  ;;  %v380_v18 = vsel %vm378_vm7, %v377_v12, %v375_v8  ;;  %v403_v31 = vpop.permute.xlu2 %402 }
 0x133   : > { %v381_v19 = vsel %vm276_vm8, %v372_v4, %v380_v18  ;;  %v382_v20 = vsel %vm277_vm9, %v373_v15, %v379_v16 }
 0x134   : > { %v397_v23 = vadd.f32 %v381_v19, %v343_v6  ;;  %v398_v24 = vadd.f32 %v382_v20, %v344_v7 }
 0x13a   : > { %v390_v21 = vpop.permute.xlu0 %389 }
 0x13b   : > { %v384_v13 = vpop.permute.xlu1 %383 }
 0x13c   : > { %v387_v25 = vsel %vm378_vm7, %v384_v13, %v386_v14  ;;  %v388_v26 = vsel %vm378_vm7, %v386_v14, %v384_v13 }
 0x143   : > { %v392_v22 = vpop.permute.xlu1 %391 }
 0x144   : > { %v393_v27 = vsel %vm371_vm6, %v390_v21, %v392_v22  ;;  %v394_v28 = vsel %vm371_vm6, %v392_v22, %v390_v21 }
 0x145   : > { %v395_v29 = vsel %vm278_vm10, %v388_v26, %v393_v27  ;;  %v396_v30 = vsel %vm279_vm11, %v387_v25, %v394_v28 }
 0x146   : > { %v399_v32 = vadd.f32 %v397_v23, %v395_v29  ;;  %v400_v33 = vadd.f32 %v398_v24, %v396_v30 }
 0x148   : > { %v405_v34 = vadd.f32 %v403_v31, %v399_v32  ;;  %v406_v35 = vadd.f32 %v403_v31, %v400_v33 }
 0x14a   : > { %407 = vst [vmem:[%s261_s24] sm:$0xff] %v405_v34 }
 0x14b   : > { %408 = vst [vmem:[%s261_s24 + $0x8] sm:$0xff] %v406_v35 }
 0x14c   : > { %808 = shalt.err (!%p805_p12)
}
 0x14d   : > { %580 = dma.vmem_to_hbm [thread:$0]  (%p1024_p0), %s426_s4, 256, %s428_s5, %s410_s1  }
 0x14e PF: > { %p600_p13 = scmp.ge.s32.totalorder %s883_s19, 2  ;;  %s439_s21 = sand.u32 1, %s855_s12  }
 0x14f   : > { %s440_s25 = scalar_lea.sflag [#allocation4], %s439_s21 }
 0x150   : > { %p594_p3 = pnand %p600_p13, %p1028_p2 }
 0x152   : > { %p595_p4 = pneg %p594_p3 }
 0x154   : > { %850 = dma.done.wait (%p595_p4), %s440_s25, 256  }
 0x155   : > { %852 = vsyncadd (%p595_p4), %s440_s25, 4294967040  ;;  %s20_s19 = sadd.s32 1, %s883_s19   ;;  %s1191_s6 = sld [smem:[#allocation14_spill]] }
 0x156   : > { %p17_p1 = scmp.ge.s32.totalorder %s20_s19, 6   ;;  %s1192_s26 = sld [smem:[#allocation12_spill]] }
 0x157   : > { %s1193_s8 = sld [smem:[#allocation13_spill]]  ;;  %s1194_s12 = smov %s859_s13 }
 0x158   : > { %s1195_s13 = smov %s863_s14  ;;  %s1197_s15 = smov %s875_s17 }
 0x159   : > { %s1198_s16 = smov %s879_s18  ;;  %19 = sbr.rel (!%p17_p1) target bundleno = 11 (0xb), region = 94 }
 0x15b   : > { %s1196_s14 = smov %s1191_s6 }
 0x15c   : > { %s1199_s17 = smov %s1192_s26 }
 0x15d   : > { %s1200_s18 = smov %s1193_s8 }
 0x15e   :  { %446 = vsyncpa [#allocation3], 1 }
 0x15f   :  { %448 = vsyncpa [#allocation3 + $0x1], 1 }
 0x160   :  { %449 = vsyncpa [#allocation6], 1 }
 0x161   :  { %451 = vsyncpa [#allocation6 + $0x1], 1 }
 0x162   :  { %452 = vsyncpa [#allocation4], 1 }
 0x163   :  { %454 = vsyncpa [#allocation4 + $0x1], 1 }

</bundles_post_ra>
